<compile_context>
chip_gen: v7x
topology: tpu7x:2x2x1
jax: 0.10.0
libtpu: 0.0.40
codegen_flags: <defaults>
</compile_context>

<pallas_src>
import jax
import jax.numpy as jnp
from jax.experimental import pallas as pl
from jax.experimental.pallas import tpu as pltpu


def _rnn_kernel(x_ref, wih_t_ref, whh_t_ref, out_ref, hn_ref):
    B, S, I = x_ref.shape
    H = whh_t_ref.shape[0]

    # (1) Hoisted input projection: one big matmul for all timesteps.
    x_all = x_ref[...].reshape(B * S, I)                       # (B*S, I)
    xproj = jnp.dot(x_all, wih_t_ref[...],
                    preferred_element_type=jnp.float32)        # (B*S, H)
    xproj = xproj.reshape(B, S, H)                             # (B, S, H)

    whh_t = whh_t_ref[...]                                     # (H, H), loaded once

    # (2) Serial recurrence; only the h @ W_hh^T term is on the critical path.
    #     S is a static (small) trace-time constant -> fully unrolled.
    h = jnp.zeros((B, H), dtype=jnp.float32)
    hs = []
    for t in range(S):
        h = jnp.tanh(
            xproj[:, t, :]
            + jnp.dot(h, whh_t, preferred_element_type=jnp.float32)
        )
        hs.append(h)

    # (3) Single slab store of the whole output, plus h_n from the f32 carry.
    out_ref[...] = jnp.stack(hs, axis=1).astype(out_ref.dtype)  # (B, S, H)
    hn_ref[0] = h.astype(hn_ref.dtype)                          # (1, B, H)


def torch_rnn_forward(x_bf, w_ih, w_hh):
    """x_bf: (batch, seq, input) f32; w_ih: (hidden, input); w_hh: (hidden, hidden).

    Returns (output, h_n) matching torch.nn.RNN(bias=False, batch_first=True).
    """
    B, S, I = x_bf.shape
    H = w_ih.shape[0]

    # Weights pre-transposed once (tiny, parameter-side op); x stays batch_first.
    wih_t = jnp.transpose(w_ih)        # (I, H)
    whh_t = jnp.transpose(w_hh)        # (H, H)

    output, h_n = pl.pallas_call(
        _rnn_kernel,
        out_shape=(
            jax.ShapeDtypeStruct((B, S, H), x_bf.dtype),   # output (batch_first)
            jax.ShapeDtypeStruct((1, B, H), x_bf.dtype),   # h_n
        ),
        # Single invocation (no grid): whole operands resident in VMEM,
        # no per-step pipeline overhead, weights loaded exactly once.
        in_specs=[
            pl.BlockSpec(memory_space=pltpu.MemorySpace.VMEM),   # x (B, S, I)
            pl.BlockSpec(memory_space=pltpu.MemorySpace.VMEM),   # W_ih^T (I, H)
            pl.BlockSpec(memory_space=pltpu.MemorySpace.VMEM),   # W_hh^T (H, H)
        ],
        out_specs=(
            pl.BlockSpec(memory_space=pltpu.MemorySpace.VMEM),
            pl.BlockSpec(memory_space=pltpu.MemorySpace.VMEM),
        ),
    )(x_bf, wih_t, whh_t)

    return output, h_n


def _reference_rnn(x_bf, w_ih, w_hh):
    """Pure-JAX reference of nn.RNN(bias=False, batch_first=True)."""
    B, S, I = x_bf.shape
    H = w_ih.shape[0]
    h = jnp.zeros((B, H), dtype=jnp.float32)
    outs = []
    for t in range(S):
        h = jnp.tanh(x_bf[:, t, :] @ w_ih.T + h @ w_hh.T)
        outs.append(h)
    out = jnp.stack(outs, axis=1)
    return out, out[:, -1, :][jnp.newaxis]


if __name__ == "__main__":
    # Shapes implied by the module: x (batch, seq, input_size); hidden_size for the RNN.
    batch, seq, input_size, hidden_size = 2, 8, 16, 32

    key = jax.random.PRNGKey(0)
    kx, kih, khh = jax.random.split(key, 3)

    # Deterministic parameter init (matches PyTorch's U(-1/sqrt(H), 1/sqrt(H)) range).
    bound = 1.0 / (hidden_size ** 0.5)
    x = jax.random.normal(kx, (batch, seq, input_size), dtype=jnp.float32)
    w_ih = jax.random.uniform(kih, (hidden_size, input_size), jnp.float32, -bound, bound)
    w_hh = jax.random.uniform(khh, (hidden_size, hidden_size), jnp.float32, -bound, bound)

    output, h_n = torch_rnn_forward(x, w_ih, w_hh)
    output = jax.block_until_ready(output)
    h_n = jax.block_until_ready(h_n)

    ref_out, ref_hn = _reference_rnn(x, w_ih, w_hh)
    assert output.shape == (batch, seq, hidden_size)
    assert h_n.shape == (1, batch, hidden_size)
    assert jnp.allclose(output, ref_out, atol=1e-5, rtol=1e-5)
    assert jnp.allclose(h_n, ref_hn, atol=1e-5, rtol=1e-5)

    print("KERNEL_OK")
</pallas_src>

<mosaic_0001>
module attributes {stable_mosaic.version = 11 : i64} {
  func.func @_rnn_kernel(%arg0: memref<2x8x16xf32, #tpu.memory_space<vmem>>, %arg1: memref<16x32xf32, #tpu.memory_space<vmem>>, %arg2: memref<32x32xf32, #tpu.memory_space<vmem>>, %arg3: memref<2x8x32xf32, #tpu.memory_space<vmem>>, %arg4: memref<1x2x32xf32, #tpu.memory_space<vmem>>) attributes {dimension_semantics = [], scalar_prefetch = 0 : i64, scratch_operands = 0 : i64, tpu.core_type = #tpu.core_type<tc>} {
    %c0 = arith.constant 0 : index
    %c0_0 = arith.constant 0 : index
    %c0_1 = arith.constant 0 : index
    %0 = vector.load %arg0[%c0, %c0_0, %c0_1] : memref<2x8x16xf32, #tpu.memory_space<vmem>>, vector<2x8x16xf32>
    %1 = vector.shape_cast %0 : vector<2x8x16xf32> to vector<16x16xf32>
    %c0_2 = arith.constant 0 : index
    %c0_3 = arith.constant 0 : index
    %2 = vector.load %arg1[%c0_2, %c0_3] : memref<16x32xf32, #tpu.memory_space<vmem>>, vector<16x32xf32>
    %cst = arith.constant dense<0.000000e+00> : vector<16x32xf32>
    %3 = tpu.matmul %1, %2, %cst {dimension_numbers = #tpu.dot_dimension_numbers<[1], [0], [0], [1], [0, 0, 1, 1], [], []>} : vector<16x16xf32>, vector<16x32xf32>, vector<16x32xf32> -> vector<16x32xf32>
    %4 = vector.shape_cast %3 : vector<16x32xf32> to vector<2x8x32xf32>
    %c0_4 = arith.constant 0 : index
    %c0_5 = arith.constant 0 : index
    %5 = vector.load %arg2[%c0_4, %c0_5] : memref<32x32xf32, #tpu.memory_space<vmem>>, vector<32x32xf32>
    %cst_6 = arith.constant 0.000000e+00 : f32
    %6 = vector.broadcast %cst_6 : f32 to vector<2x32xf32>
    %7 = vector.extract_strided_slice %4 {offsets = [0, 0, 0], sizes = [2, 1, 32], strides = [1, 1, 1]} : vector<2x8x32xf32> to vector<2x1x32xf32>
    %8 = vector.shape_cast %7 : vector<2x1x32xf32> to vector<2x32xf32>
    %cst_7 = arith.constant dense<0.000000e+00> : vector<2x32xf32>
    %9 = tpu.matmul %6, %5, %cst_7 {dimension_numbers = #tpu.dot_dimension_numbers<[1], [0], [0], [1], [0, 0, 1, 1], [], []>} : vector<2x32xf32>, vector<32x32xf32>, vector<2x32xf32> -> vector<2x32xf32>
    %10 = arith.addf %8, %9 : vector<2x32xf32>
    %11 = math.tanh %10 : vector<2x32xf32>
    %12 = vector.extract_strided_slice %4 {offsets = [0, 1, 0], sizes = [2, 1, 32], strides = [1, 1, 1]} : vector<2x8x32xf32> to vector<2x1x32xf32>
    %13 = vector.shape_cast %12 : vector<2x1x32xf32> to vector<2x32xf32>
    %cst_8 = arith.constant dense<0.000000e+00> : vector<2x32xf32>
    %14 = tpu.matmul %11, %5, %cst_8 {dimension_numbers = #tpu.dot_dimension_numbers<[1], [0], [0], [1], [0, 0, 1, 1], [], []>} : vector<2x32xf32>, vector<32x32xf32>, vector<2x32xf32> -> vector<2x32xf32>
    %15 = arith.addf %13, %14 : vector<2x32xf32>
    %16 = math.tanh %15 : vector<2x32xf32>
    %17 = vector.extract_strided_slice %4 {offsets = [0, 2, 0], sizes = [2, 1, 32], strides = [1, 1, 1]} : vector<2x8x32xf32> to vector<2x1x32xf32>
    %18 = vector.shape_cast %17 : vector<2x1x32xf32> to vector<2x32xf32>
    %cst_9 = arith.constant dense<0.000000e+00> : vector<2x32xf32>
    %19 = tpu.matmul %16, %5, %cst_9 {dimension_numbers = #tpu.dot_dimension_numbers<[1], [0], [0], [1], [0, 0, 1, 1], [], []>} : vector<2x32xf32>, vector<32x32xf32>, vector<2x32xf32> -> vector<2x32xf32>
    %20 = arith.addf %18, %19 : vector<2x32xf32>
    %21 = math.tanh %20 : vector<2x32xf32>
    %22 = vector.extract_strided_slice %4 {offsets = [0, 3, 0], sizes = [2, 1, 32], strides = [1, 1, 1]} : vector<2x8x32xf32> to vector<2x1x32xf32>
    %23 = vector.shape_cast %22 : vector<2x1x32xf32> to vector<2x32xf32>
    %cst_10 = arith.constant dense<0.000000e+00> : vector<2x32xf32>
    %24 = tpu.matmul %21, %5, %cst_10 {dimension_numbers = #tpu.dot_dimension_numbers<[1], [0], [0], [1], [0, 0, 1, 1], [], []>} : vector<2x32xf32>, vector<32x32xf32>, vector<2x32xf32> -> vector<2x32xf32>
    %25 = arith.addf %23, %24 : vector<2x32xf32>
    %26 = math.tanh %25 : vector<2x32xf32>
    %27 = vector.extract_strided_slice %4 {offsets = [0, 4, 0], sizes = [2, 1, 32], strides = [1, 1, 1]} : vector<2x8x32xf32> to vector<2x1x32xf32>
    %28 = vector.shape_cast %27 : vector<2x1x32xf32> to vector<2x32xf32>
    %cst_11 = arith.constant dense<0.000000e+00> : vector<2x32xf32>
    %29 = tpu.matmul %26, %5, %cst_11 {dimension_numbers = #tpu.dot_dimension_numbers<[1], [0], [0], [1], [0, 0, 1, 1], [], []>} : vector<2x32xf32>, vector<32x32xf32>, vector<2x32xf32> -> vector<2x32xf32>
    %30 = arith.addf %28, %29 : vector<2x32xf32>
    %31 = math.tanh %30 : vector<2x32xf32>
    %32 = vector.extract_strided_slice %4 {offsets = [0, 5, 0], sizes = [2, 1, 32], strides = [1, 1, 1]} : vector<2x8x32xf32> to vector<2x1x32xf32>
    %33 = vector.shape_cast %32 : vector<2x1x32xf32> to vector<2x32xf32>
    %cst_12 = arith.constant dense<0.000000e+00> : vector<2x32xf32>
    %34 = tpu.matmul %31, %5, %cst_12 {dimension_numbers = #tpu.dot_dimension_numbers<[1], [0], [0], [1], [0, 0, 1, 1], [], []>} : vector<2x32xf32>, vector<32x32xf32>, vector<2x32xf32> -> vector<2x32xf32>
    %35 = arith.addf %33, %34 : vector<2x32xf32>
    %36 = math.tanh %35 : vector<2x32xf32>
    %37 = vector.extract_strided_slice %4 {offsets = [0, 6, 0], sizes = [2, 1, 32], strides = [1, 1, 1]} : vector<2x8x32xf32> to vector<2x1x32xf32>
    %38 = vector.shape_cast %37 : vector<2x1x32xf32> to vector<2x32xf32>
    %cst_13 = arith.constant dense<0.000000e+00> : vector<2x32xf32>
    %39 = tpu.matmul %36, %5, %cst_13 {dimension_numbers = #tpu.dot_dimension_numbers<[1], [0], [0], [1], [0, 0, 1, 1], [], []>} : vector<2x32xf32>, vector<32x32xf32>, vector<2x32xf32> -> vector<2x32xf32>
    %40 = arith.addf %38, %39 : vector<2x32xf32>
    %41 = math.tanh %40 : vector<2x32xf32>
    %42 = vector.extract_strided_slice %4 {offsets = [0, 7, 0], sizes = [2, 1, 32], strides = [1, 1, 1]} : vector<2x8x32xf32> to vector<2x1x32xf32>
    %43 = vector.shape_cast %42 : vector<2x1x32xf32> to vector<2x32xf32>
    %cst_14 = arith.constant dense<0.000000e+00> : vector<2x32xf32>
    %44 = tpu.matmul %41, %5, %cst_14 {dimension_numbers = #tpu.dot_dimension_numbers<[1], [0], [0], [1], [0, 0, 1, 1], [], []>} : vector<2x32xf32>, vector<32x32xf32>, vector<2x32xf32> -> vector<2x32xf32>
    %45 = arith.addf %43, %44 : vector<2x32xf32>
    %46 = math.tanh %45 : vector<2x32xf32>
    %47 = vector.shape_cast %11 : vector<2x32xf32> to vector<2x1x32xf32>
    %48 = vector.shape_cast %16 : vector<2x32xf32> to vector<2x1x32xf32>
    %49 = vector.shape_cast %21 : vector<2x32xf32> to vector<2x1x32xf32>
    %50 = vector.shape_cast %26 : vector<2x32xf32> to vector<2x1x32xf32>
    %51 = vector.shape_cast %31 : vector<2x32xf32> to vector<2x1x32xf32>
    %52 = vector.shape_cast %36 : vector<2x32xf32> to vector<2x1x32xf32>
    %53 = vector.shape_cast %41 : vector<2x32xf32> to vector<2x1x32xf32>
    %54 = vector.shape_cast %46 : vector<2x32xf32> to vector<2x1x32xf32>
    %55 = tpu.concatenate %47, %48, %49, %50, %51, %52, %53, %54 in 1 : vector<2x1x32xf32>, vector<2x1x32xf32>, vector<2x1x32xf32>, vector<2x1x32xf32>, vector<2x1x32xf32>, vector<2x1x32xf32>, vector<2x1x32xf32>, vector<2x1x32xf32> -> vector<2x8x32xf32>
    %c0_15 = arith.constant 0 : index
    %c0_16 = arith.constant 0 : index
    %c0_17 = arith.constant 0 : index
    %56 = vector.load %arg3[%c0_15, %c0_16, %c0_17] : memref<2x8x32xf32, #tpu.memory_space<vmem>>, vector<2x8x32xf32>
    tpu.vector_store %arg3[%c0_15, %c0_16, %c0_17], %55 {strides = array<i32>} : memref<2x8x32xf32, #tpu.memory_space<vmem>>, vector<2x8x32xf32>,
    %c0_18 = arith.constant 0 : index
    %c0_19 = arith.constant 0 : index
    %c0_20 = arith.constant 0 : index
    %57 = vector.load %arg4[%c0_18, %c0_19, %c0_20] : memref<1x2x32xf32, #tpu.memory_space<vmem>>, vector<1x2x32xf32>
    %58 = vector.shape_cast %57 : vector<1x2x32xf32> to vector<2x32xf32>
    %59 = vector.shape_cast %46 : vector<2x32xf32> to vector<1x2x32xf32>
    tpu.vector_store %arg4[%c0_18, %c0_19, %c0_20], %59 {strides = array<i32>} : memref<1x2x32xf32, #tpu.memory_space<vmem>>, vector<1x2x32xf32>,
    return
  }
}

</mosaic_0001>

<bundles_post_ra>
// kernel: tpu_custom_call.1
= control target key start
LH: loop header
LB: loop body
LE: loop exit
PB: predicated region body
PF: predicated region fallthrough
CT: control target
= control target key end

     0   :  { %10 = vsyncpa [#allocation3], 0  ;;  %s1461_s0 = inlined_call_operand.hbm [shape: f32[2,8,16], index: 0, kind: input, shape index: {}]   ;;  %s1462_s1 = inlined_call_operand.hbm [shape: f32[16,32], index: 1, kind: input, shape index: {}]   ;;  %s1463_s2 = inlined_call_operand.hbm [shape: f32[32,32], index: 2, kind: input, shape index: {}]   ;;  %s1464_s3 = inlined_call_operand.hbm [shape: f32[2,8,32], index: 3, kind: output, shape index: {0}]   ;;  %s1465_s4 = inlined_call_operand.hbm [shape: f32[1,2,32], index: 4, kind: output, shape index: {1}]  }
   0x1   :  { %11 = vsyncpa [#allocation6], 0 }
   0x2   :  { %12 = vsyncpa [#allocation4], 0 }
   0x3   :  { %13 = vsyncpa [#allocation10], 0  ;;  %s1255_s15 = smov [#allocation5]   ;;  %s1256_s17 = smov [#allocation2]  }
   0x4   :  { %s31_s16 = sshll.u32 %s1255_s15, 4  ;;  %s19_s18 = sshll.u32 %s1256_s17, 4  ;;  %s32_s16 = int_to_ptr.vmem [resolvable:$true] %s31_s16  ;;  %s1290_s18 = int_to_ptr.vmem [resolvable:$true] %s19_s18 }
   0x5   :  { %s1137_s21 = scalar_lea.hbm %s1462_s1, 256 }
   0x6   :  { %p1138_p0 = scmp.ne.s32.totalorder %s1462_s1, %s1137_s21  ;;  %p1141_p1 = scmp.lt.u32.totalorder %s1137_s21, %s1462_s1 }
   0x8   :  { %p1143_p2 = pnand %p1141_p1, %p1138_p0 }
   0xa   :  { %1146 = shalt.err (!%p1143_p2)
}
   0xb   :  { %s1147_s26 = scalar_lea.vmem %s32_s16, 256  ;;  %p1152_p4 = scmp.lt.s32.totalorder %s32_s16, %s32_s16 }
   0xc   :  { %p1148_p3 = scmp.ne.s32.totalorder %s32_s16, %s1147_s26  ;;  %p1153_p5 = scmp.lt.s32.totalorder %s1147_s26, %s1147_s26 }
   0xe   :  { %p1154_p6 = por %p1153_p5, %p1152_p4 }
  0x10   :  { %p1155_p7 = pnand %p1154_p6, %p1148_p3 }
  0x12   :  { %1158 = shalt.err (!%p1155_p7)
}
  0x13   :  { %s1257_s27 = smov 128   ;;  %s1258_s28 = smov 8  }
  0x14   :  { %37 = dma.hbm_to_vmem [thread:$0]  %s1462_s1, 256, %s32_s16, [#allocation6], %s1257_s27, %s1257_s27, %s1258_s28  }
  0x15   :  { %s1159_s7 = scalar_lea.hbm %s1461_s0, 256 }
  0x16   :  { %p1160_p8 = scmp.ne.s32.totalorder %s1461_s0, %s1159_s7  ;;  %p1163_p9 = scmp.lt.u32.totalorder %s1159_s7, %s1461_s0 }
  0x18   :  { %p1165_p10 = pnand %p1163_p9, %p1160_p8 }
  0x1a   :  { %1168 = shalt.err (!%p1165_p10)
}
  0x1b   :  { %s1169_s12 = scalar_lea.vmem %s1290_s18, 256  ;;  %p1174_p12 = scmp.lt.s32.totalorder %s1290_s18, %s1290_s18 }
  0x1c   :  { %p1170_p11 = scmp.ne.s32.totalorder %s1290_s18, %s1169_s12  ;;  %p1175_p13 = scmp.lt.s32.totalorder %s1169_s12, %s1169_s12 }
  0x1e   :  { %p1176_p0 = por %p1175_p13, %p1174_p12 }
  0x20   :  { %p1177_p1 = pnand %p1176_p0, %p1170_p11 }
  0x22   :  { %1180 = shalt.err (!%p1177_p1)
}
  0x23   :  { %25 = dma.hbm_to_vmem [thread:$0]  %s1461_s0, 256, %s1290_s18, [#allocation3], %s1257_s27, %s1257_s27, %s1258_s28  }
  0x24   :  { %s1259_s14 = smov [#allocation7]   ;;  %s1181_s19 = scalar_lea.hbm %s1463_s2, 512 }
  0x25   :  { %s43_s15 = sshll.u32 %s1259_s14, 4  ;;  %p1182_p2 = scmp.ne.s32.totalorder %s1463_s2, %s1181_s19  ;;  %s44_s15 = int_to_ptr.vmem [resolvable:$true] %s43_s15 }
  0x26   :  { %p1185_p3 = scmp.lt.u32.totalorder %s1181_s19, %s1463_s2 }
  0x28   :  { %p1187_p4 = pnand %p1185_p3, %p1182_p2 }
  0x2a   :  { %1190 = shalt.err (!%p1187_p4)
}
  0x2b   :  { %s1191_s24 = scalar_lea.vmem %s44_s15, 512  ;;  %p1196_p6 = scmp.lt.s32.totalorder %s44_s15, %s44_s15 }
  0x2c   :  { %p1192_p5 = scmp.ne.s32.totalorder %s44_s15, %s1191_s24  ;;  %p1197_p7 = scmp.lt.s32.totalorder %s1191_s24, %s1191_s24 }
  0x2e   :  { %p1198_p8 = por %p1197_p7, %p1196_p6 }
  0x30   :  { %p1199_p9 = pnand %p1198_p8, %p1192_p5 }
  0x32   :  { %1202 = shalt.err (!%p1199_p9)
}
  0x33   :  { %49 = dma.hbm_to_vmem [thread:$0]  %s1463_s2, 512, %s44_s15, [#allocation6], %s1257_s27, %s1257_s27, %s1258_s28  }
  0x34   :  { %1247 = dma.done.wait [#allocation3], 256  }
  0x35   :  { %1248 = vsyncadd [#allocation3], 4294967040 }
  0x36   :  { %1249 = dma.done.wait [#allocation6], 768  }
  0x37   :  { %1250 = vsyncadd [#allocation6], 4294966528  ;;  %v1260_v0 = vmov 0.0|0.0   ;;  %vm1261_vm0 = vmmov 0   ;;  %v1262_v1 = vmov 0.0   ;;  %v145_v2 = vld [vmem:[#allocation7] sm:$0xff] }
  0x38   :  { %1047 = vmatprep.subr.bf16.mxu1 %v1260_v0  ;;  %963 = vmatprep.mubr.msk.f32.mxu1 %vm1261_vm0, %v1262_v1  ;;  %v146_v3 = vld [vmem:[#allocation7 + $0x8] sm:$0xff]  ;;  %v61_v4 = vld [vmem:[#allocation5] sm:$0xff]  ;;  %vm63_vm1 = vcmask 130048   ;;  %v62_v6 = vld [vmem:[#allocation5 + $0x8] sm:$0xff]  ;;  %vm234_vm2 = vcmask 1041409   ;;  %vm149_vm3 = vcmask 261120  }
  0x39   :  { %v1345_v5 = vpack.c.bf16 %v146_v3, %v145_v2  ;;  %v147_v7 = vld [vmem:[#allocation7 + $0x10] sm:$0xff]  ;;  %v148_v8 = vld [vmem:[#allocation7 + $0x18] sm:$0xff]  ;;  %v1043_v9 = vpack.c.bf16 %v62_v6, %v61_v4  ;;  %v59_v10 = vld [vmem:[#allocation2] sm:$0xff]  ;;  %vm831_vm4 = vcmask 1040384   ;;  %vm834_vm5 = vcmask 1041408   ;;  %s1263_s2 = smov [#allocation8]  }
  0x3a   :  { %v1348_v11 = vpack.c.bf16 %v148_v8, %v147_v7  ;;  %952 = vmatprep.mubr.msk.f32.mxu0 %vm63_vm1, %v59_v10  ;;  %v60_v12 = vld [vmem:[#allocation2 + $0x8] sm:$0xff]  ;;  %vm837_vm6 = vcmask 1042432   ;;  %vm840_vm7 = vcmask 1043456   ;;  %vm843_vm8 = vcmask 1044480   ;;  %s868_s25 = sshll.u32 %s1263_s2, 4  ;;  %s1264_s26 = smov [#allocation9]   ;;  %s869_s25 = int_to_ptr.vmem [resolvable:$true] %s868_s25 }
  0x3b   :  { %1049 = vmatpush3.bf16.msra.mxu1 %v1345_v5  ;;  %1044 = vmatprep.subr.bf16.mxu0 %v1043_v9  ;;  %vm846_vm9 = vcmask 1045504   ;;  %vm849_vm10 = vcmask 1046528   ;;  %vm859_vm11 = vcmask 261127   ;;  %s881_s29 = sshll.u32 %s1264_s26, 4  ;;  %vm861_vm12 = vcmask 253952   ;;  %s1203_s30 = scalar_lea.vmem %s869_s25, 256  ;;  %s882_s29 = int_to_ptr.vmem [resolvable:$true] %s881_s29 }
  0x3c   :  { %1050 = vmatprep.subr.bf16.mxu1 %v1260_v0  ;;  %1046 = vmatpush3.bf16.msra.mxu0 %v1043_v9  ;;  %p1204_p10 = scmp.ne.s32.totalorder %s869_s25, %s1203_s30  ;;  %p1208_p11 = scmp.lt.s32.totalorder %s869_s25, %s869_s25 }
  0x3d   :  { %1053 = vmatprep.subr.bf16.mxu0 %v1260_v0  ;;  %p1209_p12 = scmp.lt.s32.totalorder %s1203_s30, %s1203_s30 }
  0x3f   :  { %1052 = vmatpush3.bf16.msra.mxu1 %v1348_v11  ;;  %953 = vmatmul.mubr.msk.f32.vlgmr.msra.gmra.mrb[0].mxu0 %vm63_vm1, %v60_v12  ;;  %p1210_p13 = por %p1209_p12, %p1208_p11 }
  0x40   :  { %1059 = vmatprep.subr.bf16.mxu1 %v1260_v0  ;;  %1055 = vmatpush3.bf16.msra.mxu0 %v1345_v5 }
  0x41   :  { %974 = vmatprep.mubr.msk.f32.mxu0 %vm1261_vm0, %v1262_v1  ;;  %1056 = vmatprep.subr.bf16.mxu0 %v1260_v0  ;;  %p1211_p0 = pnand %p1210_p13, %p1204_p10 }
  0x42   :  { %964 = vmatmul.mubr.f32.vlgmr.msra.gmra.mrb[0].mxu1 %v1262_v1 }
  0x43   :  { %1061 = vmatpush3.bf16.msra.mxu1 %v1345_v5  ;;  %985 = vmatprep.mubr.msk.f32.mxu1 %vm1261_vm0, %v1262_v1 }
  0x44   :  { %1062 = vmatprep.subr.bf16.mxu1 %v1260_v0  ;;  %1058 = vmatpush3.bf16.msra.mxu0 %v1348_v11 }
  0x45   :  { %1065 = vmatprep.subr.bf16.mxu0 %v1260_v0 }
  0x47   :  { %1064 = vmatpush3.bf16.msra.mxu1 %v1348_v11 }
  0x48   :  { %1071 = vmatprep.subr.bf16.mxu1 %v1260_v0 }
 0x112   :  { %v1369_v13 = vpop.f32.mrb[0].mxu0 }
 0x113   :  { %v1371_v14 = vpop.f32.mrb[1].mxu0 }
 0x115   :  { %v219_v15 = vpop.f32.mrb[0].mxu1 }
 0x116   :  { %v224_v16 = vrot.slane %v219_v15, 1  ;;  %v227_v17 = vadd.f32 %v219_v15, %v1371_v14  ;;  %v965_v18 = vpop.f32.mrb[1].mxu1 }
 0x118   :  { %v228_v19 = vadd.f32 %v1369_v13, %v224_v16 }
 0x11a   :  { %1105 = vtanh.f32 %v228_v19 }
 0x11b   :  { %1107 = vtanh.f32 %v227_v17 }
 0x124   :  { %v1106_v20 = vpop.eup %1105 }
 0x125   :  { %v233_v21 = vrot.slane %v1106_v20, 7  ;;  %v1108_v22 = vpop.eup %1107 }
 0x127   :  { %v235_v23 = vsel %vm234_vm2, %v233_v21, %v1108_v22 }
 0x128   :  { %975 = vmatmul.mubr.msk.f32.vlgmr.msra.gmra.mrb[2].mxu0 %vm149_vm3, %v235_v23 }
 0x129   :  { %1067 = vmatpush3.bf16.msra.mxu0 %v1345_v5  ;;  %996 = vmatprep.mubr.msk.f32.mxu0 %vm1261_vm0, %v1262_v1 }
 0x12a   :  { %1068 = vmatprep.subr.bf16.mxu0 %v1260_v0 }
 0x12d   :  { %1070 = vmatpush3.bf16.msra.mxu0 %v1348_v11 }
 0x12e   :  { %1077 = vmatprep.subr.bf16.mxu0 %v1260_v0 }
 0x1fb   :  { %v304_v24 = vpop.f32.mrb[2].mxu0 }
 0x1fc   :  { %v309_v25 = vrot.slane %v304_v24, 7  ;;  %v313_v26 = vadd.f32 %v1369_v13, %v304_v24  ;;  %v976_v27 = vpop.f32.mrb[3].mxu0 }
 0x1fe   :  { %v312_v28 = vadd.f32 %v309_v25, %v1371_v14 }
 0x200   :  { %1109 = vtanh.f32 %v312_v28 }
 0x201   :  { %1111 = vtanh.f32 %v313_v26 }
 0x20a   :  { %v1110_v29 = vpop.eup %1109 }
 0x20b   :  { %v318_v30 = vrot.slane %v1110_v29, 1  ;;  %v1112_v31 = vpop.eup %1111  ;;  %v832_v40 = vsel %vm831_vm4, %v1108_v22, %v1110_v29 }
 0x20c   :  { %v833_v43 = vsel %vm831_vm4, %v1106_v20, %v1112_v31 }
 0x20d   :  { %v319_v32 = vsel %vm234_vm2, %v1112_v31, %v318_v30 }
 0x20e   :  { %986 = vmatmul.mubr.msk.f32.vlgmr.msra.gmra.mrb[2].mxu1 %vm149_vm3, %v319_v32 }
 0x20f   :  { %1073 = vmatpush3.bf16.msra.mxu1 %v1345_v5  ;;  %1007 = vmatprep.mubr.msk.f32.mxu1 %vm1261_vm0, %v1262_v1 }
 0x210   :  { %1074 = vmatprep.subr.bf16.mxu1 %v1260_v0 }
 0x213   :  { %1076 = vmatpush3.bf16.msra.mxu1 %v1348_v11 }
 0x214   :  { %1083 = vmatprep.subr.bf16.mxu1 %v1260_v0 }
 0x2e1   :  { %v388_v33 = vpop.f32.mrb[2].mxu1 }
 0x2e2   :  { %v393_v34 = vrot.slane %v388_v33, 6  ;;  %v394_v35 = vrot.slane %v388_v33, 7  ;;  %v987_v36 = vpop.f32.mrb[3].mxu1 }
 0x2e4   :  { %v397_v37 = vadd.f32 %v393_v34, %v1371_v14  ;;  %v398_v38 = vadd.f32 %v1369_v13, %v394_v35 }
 0x2e6   :  { %1113 = vtanh.f32 %v397_v37 }
 0x2e7   :  { %1115 = vtanh.f32 %v398_v38 }
 0x2f0   :  { %v1114_v39 = vpop.eup %1113 }
 0x2f1   :  { %v1116_v41 = vpop.eup %1115  ;;  %v403_v42 = vrot.slane %v1114_v39, 2  ;;  %v835_v44 = vsel %vm834_vm5, %v832_v40, %v1114_v39 }
 0x2f2   :  { %v404_v45 = vrot.slane %v1116_v41, 1  ;;  %v836_v46 = vsel %vm834_vm5, %v833_v43, %v1116_v41 }
 0x2f4   :  { %v405_v47 = vsel %vm234_vm2, %v404_v45, %v403_v42 }
 0x2f5   :  { %997 = vmatmul.mubr.msk.f32.vlgmr.msra.gmra.mrb[4].mxu0 %vm149_vm3, %v405_v47 }
 0x2f6   :  { %1079 = vmatpush3.bf16.msra.mxu0 %v1345_v5  ;;  %1018 = vmatprep.mubr.msk.f32.mxu0 %vm1261_vm0, %v1262_v1 }
 0x2f7   :  { %1080 = vmatprep.subr.bf16.mxu0 %v1260_v0 }
 0x2fa   :  { %1082 = vmatpush3.bf16.msra.mxu0 %v1348_v11 }
 0x2fb   :  { %1089 = vmatprep.subr.bf16.mxu0 %v1260_v0 }
 0x3c8   :  { %v474_v48 = vpop.f32.mrb[4].mxu0 }
 0x3c9   :  { %v479_v49 = vrot.slane %v474_v48, 5  ;;  %v480_v50 = vrot.slane %v474_v48, 6  ;;  %v998_v51 = vpop.f32.mrb[5].mxu0 }
 0x3cb   :  { %v483_v52 = vadd.f32 %v479_v49, %v1371_v14  ;;  %v484_v53 = vadd.f32 %v1369_v13, %v480_v50 }
 0x3cd   :  { %1117 = vtanh.f32 %v483_v52 }
 0x3ce   :  { %1119 = vtanh.f32 %v484_v53 }
 0x3d7   :  { %v1118_v54 = vpop.eup %1117 }
 0x3d8   :  { %v1120_v55 = vpop.eup %1119  ;;  %v489_v56 = vrot.slane %v1118_v54, 3  ;;  %v838_v57 = vsel %vm837_vm6, %v835_v44, %v1118_v54 }
 0x3d9   :  { %v490_v58 = vrot.slane %v1120_v55, 2  ;;  %v839_v59 = vsel %vm837_vm6, %v836_v46, %v1120_v55 }
 0x3db   :  { %v491_v60 = vsel %vm234_vm2, %v490_v58, %v489_v56 }
 0x3dc   :  { %1008 = vmatmul.mubr.msk.f32.vlgmr.msra.gmra.mrb[4].mxu1 %vm149_vm3, %v491_v60 }
 0x3dd   :  { %1085 = vmatpush3.bf16.msra.mxu1 %v1345_v5  ;;  %1029 = vmatprep.mubr.msk.f32.mxu1 %vm1261_vm0, %v1262_v1 }
 0x3de   :  { %1086 = vmatprep.subr.bf16.mxu1 %v1260_v0 }
 0x3e1   :  { %1088 = vmatpush3.bf16.msra.mxu1 %v1348_v11 }
 0x4af   :  { %v560_v61 = vpop.f32.mrb[4].mxu1 }
 0x4b0   :  { %v565_v62 = vrot.slane %v560_v61, 4  ;;  %v566_v63 = vrot.slane %v560_v61, 5  ;;  %v1009_v2 = vpop.f32.mrb[5].mxu1 }
 0x4b2   :  { %v569_v3 = vadd.f32 %v565_v62, %v1371_v14  ;;  %v570_v4 = vadd.f32 %v1369_v13, %v566_v63 }
 0x4b4   :  { %1121 = vtanh.f32 %v569_v3 }
 0x4b5   :  { %1123 = vtanh.f32 %v570_v4 }
 0x4be   :  { %v1122_v6 = vpop.eup %1121 }
 0x4bf   :  { %v1124_v7 = vpop.eup %1123  ;;  %v575_v8 = vrot.slane %v1122_v6, 4  ;;  %v841_v9 = vsel %vm840_vm7, %v838_v57, %v1122_v6 }
 0x4c0   :  { %v576_v10 = vrot.slane %v1124_v7, 3  ;;  %v842_v12 = vsel %vm840_vm7, %v839_v59, %v1124_v7 }
 0x4c2   :  { %v577_v15 = vsel %vm234_vm2, %v576_v10, %v575_v8 }
 0x4c3   :  { %1019 = vmatmul.mubr.msk.f32.vlgmr.msra.gmra.mrb[6].mxu0 %vm149_vm3, %v577_v15 }
 0x4c4   :  { %1091 = vmatpush3.bf16.msra.mxu0 %v1345_v5  ;;  %1040 = vmatprep.mubr.msk.f32.mxu0 %vm1261_vm0, %v1262_v1 }
 0x4c5   :  { %1092 = vmatprep.subr.bf16.mxu0 %v1260_v0 }
 0x4c8   :  { %1094 = vmatpush3.bf16.msra.mxu0 %v1348_v11 }
 0x596   :  { %v646_v16 = vpop.f32.mrb[6].mxu0 }
 0x597   :  { %v651_v17 = vrot.slane %v646_v16, 3  ;;  %v652_v18 = vrot.slane %v646_v16, 4  ;;  %v1020_v19 = vpop.f32.mrb[7].mxu0 }
 0x599   :  { %v655_v20 = vadd.f32 %v651_v17, %v1371_v14  ;;  %v656_v21 = vadd.f32 %v1369_v13, %v652_v18 }
 0x59b   :  { %1125 = vtanh.f32 %v655_v20 }
 0x59c   :  { %1127 = vtanh.f32 %v656_v21 }
 0x5a5   :  { %v1126_v22 = vpop.eup %1125 }
 0x5a6   :  { %v1128_v5 = vpop.eup %1127  ;;  %v661_v23 = vrot.slane %v1126_v22, 5  ;;  %v844_v24 = vsel %vm843_vm8, %v841_v9, %v1126_v22 }
 0x5a7   :  { %v662_v1 = vrot.slane %v1128_v5, 4  ;;  %v845_v25 = vsel %vm843_vm8, %v842_v12, %v1128_v5 }
 0x5a9   :  { %v663_v0 = vsel %vm234_vm2, %v662_v1, %v661_v23 }
 0x5aa   :  { %1030 = vmatmul.mubr.msk.f32.vlgmr.msra.gmra.mrb[6].mxu1 %vm149_vm3, %v663_v0 }
 0x67d   :  { %v732_v11 = vpop.f32.mrb[6].mxu1 }
 0x67e   :  { %v737_v26 = vrot.slane %v732_v11, 2  ;;  %v738_v27 = vrot.slane %v732_v11, 3  ;;  %v1031_v28 = vpop.f32.mrb[7].mxu1 }
 0x680   :  { %v741_v29 = vadd.f32 %v737_v26, %v1371_v14  ;;  %v742_v30 = vadd.f32 %v1369_v13, %v738_v27 }
 0x682   :  { %1129 = vtanh.f32 %v741_v29 }
 0x683   :  { %1131 = vtanh.f32 %v742_v30 }
 0x68c   :  { %v1130_v31 = vpop.eup %1129 }
 0x68d   :  { %v1132_v32 = vpop.eup %1131  ;;  %v747_v33 = vrot.slane %v1130_v31, 6  ;;  %v847_v34 = vsel %vm846_vm9, %v844_v24, %v1130_v31 }
 0x68e   :  { %v748_v35 = vrot.slane %v1132_v32, 5  ;;  %v848_v36 = vsel %vm846_vm9, %v845_v25, %v1132_v32 }
 0x690   :  { %v749_v37 = vsel %vm234_vm2, %v748_v35, %v747_v33 }
 0x691   :  { %1041 = vmatmul.mubr.msk.f32.vlgmr.msra.gmra.mrb[8].mxu0 %vm149_vm3, %v749_v37 }
 0x764   :  { %v818_v38 = vpop.f32.mrb[8].mxu0 }
 0x765   :  { %v823_v39 = vrot.slane %v818_v38, 1  ;;  %v824_v40 = vrot.slane %v818_v38, 2  ;;  %v1042_v41 = vpop.f32.mrb[9].mxu0 }
 0x767   :  { %v827_v42 = vadd.f32 %v823_v39, %v1371_v14  ;;  %v828_v43 = vadd.f32 %v1369_v13, %v824_v40 }
 0x769   :  { %1133 = vtanh.f32 %v827_v42 }
 0x76a   :  { %1135 = vtanh.f32 %v828_v43 }
 0x773   :  { %v1134_v44 = vpop.eup %1133 }
 0x774   :  { %v1136_v45 = vpop.eup %1135  ;;  %v850_v46 = vsel %vm849_vm10, %v847_v34, %v1134_v44  ;;  %860 = vst.msk [vmem:[#allocation9 - $0x7] sm:$0x80] %vm859_vm11, %v1134_v44 }
 0x775   :  { %v851_v47 = vsel %vm849_vm10, %v848_v36, %v1136_v45  ;;  %852 = vst.msk [vmem:[#allocation8] sm:$0xff] %vm149_vm3, %v850_v46  ;;  %v856_v14 = vrot.slane %v1136_v45, 7 }
 0x776   :  { %853 = vst.msk [vmem:[#allocation8 + $0x8] sm:$0xff] %vm149_vm3, %v851_v47 }
 0x777   :  { %1214 = shalt.err (!%p1211_p0)
}
 0x778   :  { %s1215_s7 = scalar_lea.hbm %s1464_s3, 256 }
 0x779   :  { %p1216_p1 = scmp.ne.s32.totalorder %s1464_s3, %s1215_s7  ;;  %p1219_p2 = scmp.lt.u32.totalorder %s1215_s7, %s1464_s3 }
 0x77b   :  { %p1221_p3 = pnand %p1219_p2, %p1216_p1 }
 0x77d   :  { %1224 = shalt.err (!%p1221_p3)
}
 0x77e   :  { %874 = dma.vmem_to_hbm [thread:$0]  %s869_s25, 256, %s1464_s3, [#allocation4], %s1257_s27, %s1257_s27, %s1258_s28   ;;  %862 = vst.msk [vmem:[#allocation9 + $0x1] sm:$0x1] %vm861_vm12, %v856_v14 }
 0x77f   :  { %s1225_s13 = scalar_lea.vmem %s882_s29, 32  ;;  %p1230_p5 = scmp.lt.s32.totalorder %s882_s29, %s882_s29 }
 0x780   :  { %p1226_p4 = scmp.ne.s32.totalorder %s882_s29, %s1225_s13  ;;  %p1231_p6 = scmp.lt.s32.totalorder %s1225_s13, %s1225_s13 }
 0x782   :  { %p1232_p7 = por %p1231_p6, %p1230_p5 }
 0x784   :  { %p1233_p8 = pnand %p1232_p7, %p1226_p4 }
 0x786   :  { %1236 = shalt.err (!%p1233_p8)
}
 0x787   :  { %s1237_s16 = scalar_lea.hbm %s1465_s4, 32 }
 0x788   :  { %p1238_p9 = scmp.ne.s32.totalorder %s1465_s4, %s1237_s16  ;;  %p1241_p10 = scmp.lt.u32.totalorder %s1237_s16, %s1465_s4 }
 0x78a   :  { %p1243_p11 = pnand %p1241_p10, %p1238_p9 }
 0x78c   :  { %1246 = shalt.err (!%p1243_p11)
}
 0x78d   :  { %884 = dma.vmem_to_hbm [thread:$0]  %s882_s29, 32, %s1465_s4, [#allocation10]  }
 0x78e   :  { %1251 = dma.done.wait [#allocation4], 256  }
 0x78f   :  { %1252 = vsyncadd [#allocation4], 4294967040 }
 0x790   :  { %1253 = dma.done.wait [#allocation10], 32  }
 0x791   :  { %1254 = vsyncadd [#allocation10], 4294967264 }
 0x792   :  { %891 = vsyncpa [#allocation3], 1 }
 0x793   :  { %892 = vsyncpa [#allocation6], 1 }
 0x794   :  { %893 = vsyncpa [#allocation4], 1 }
 0x795   :  { %894 = vsyncpa [#allocation10], 1 }

</bundles_post_ra>
